<compile_context>
chip_gen: v7x
topology: tpu7x:2x2x1
jax: 0.10.0
libtpu: 0.0.40
codegen_flags: <defaults>
</compile_context>

<pallas_src>
import jax
import jax.numpy as jnp
from jax.experimental import pallas as pl
from jax.experimental.pallas import tpu as pltpu


def _loss_rr_kernel(in_s_ref, out_r_ref, out_ref):
    x = in_s_ref[...]            # (TB, L) tokens of input_s (native dtype)
    y = out_r_ref[...]           # (TB, L) tokens of output_r
    TB, L = x.shape

    # Position index along the sequence axis (2-D iota, lane axis last).
    pos = jax.lax.broadcasted_iota(jnp.int32, (TB, L), dimension=1)

    # First EOS (token == 0) position per row; L if no EOS present.  (XLU reduce.)
    first_zero = jnp.min(jnp.where(x == 0, pos, jnp.int32(L)), axis=1, keepdims=True)  # (TB,1)

    # mismatch = (x*mask != y*mask)  ==  (x != y) AND mask   (no integer multiplies)
    mask = pos < first_zero                                  # (TB, L) bool
    mismatch = jnp.logical_and(x != y, mask)                 # (TB, L) bool

    loss = jnp.sum(mismatch.astype(jnp.int32), axis=1, keepdims=True).astype(jnp.float32)  # (TB,1)
    length = first_zero.astype(jnp.float32)                  # (TB,1)
    acc = jnp.float32(1.0) - loss / length                   # (TB,1)

    # Single merged writeback: column 0 = loss, column 1 = acc.
    out_ref[...] = jnp.concatenate([loss, acc], axis=-1)     # (TB, 2)


def loss_rr(input_s, output_s=None, input_r=None, output_r=None, label=None, *, block_b=None):
    """Pallas implementation of LossRR.forward.

    input_s, output_r: integer arrays of shape (B, L) (any integer dtype).
    Returns (loss, {'acc': acc}) with loss, acc of shape (B,) float32.
    output_s, input_r, label are unused by LossRR (kept for signature parity).
    """
    assert output_r is not None
    B, L = input_s.shape

    # Compare in a common dtype (avoids signed/unsigned promotion surprises).
    if input_s.dtype != output_r.dtype:
        common = jnp.promote_types(input_s.dtype, output_r.dtype)
        input_s = input_s.astype(common)
        output_r = output_r.astype(common)

    itemsize = jnp.dtype(input_s.dtype).itemsize
    if block_b is None:
        # ~2 MiB per input block; x2 inputs x2 pipeline buffers stays well under the
        # scoped-VMEM default on every generation (incl. v7x's smaller VMEM).
        target_bytes = 2 * 1024 * 1024
        tb = max(8, (target_bytes // max(1, L * itemsize)) // 8 * 8)
        block_b = int(min(tb, 1024))
    # Never use a tile bigger than the (sublane-rounded) batch itself.
    block_b = int(min(block_b, ((B + 7) // 8) * 8))
    block_b = max(8, (block_b // 8) * 8)

    # Pad batch to a whole number of tiles.  Padded rows start with EOS (token 0),
    # producing length 0 -> nan/inf in acc, but they are sliced off below.
    B_pad = ((B + block_b - 1) // block_b) * block_b
    if B_pad != B:
        pad = B_pad - B
        input_s = jnp.pad(input_s, ((0, pad), (0, 0)))
        output_r = jnp.pad(output_r, ((0, pad), (0, 0)))

    grid = (B_pad // block_b,)

    out = pl.pallas_call(
        _loss_rr_kernel,
        out_shape=jax.ShapeDtypeStruct((B_pad, 2), jnp.float32),
        grid=grid,
        in_specs=[
            pl.BlockSpec((block_b, L), lambda i: (i, 0)),
            pl.BlockSpec((block_b, L), lambda i: (i, 0)),
        ],
        out_specs=pl.BlockSpec((block_b, 2), lambda i: (i, 0)),
        compiler_params=pltpu.CompilerParams(
            dimension_semantics=("parallel",),
        ),
    )(input_s, output_r)

    loss = out[:B, 0]
    acc = out[:B, 1]
    return loss, {"acc": acc}


def _loss_rr_ref(input_s, output_r):
    """Pure-JAX reference for correctness checking."""
    B, L = input_s.shape
    pos = jnp.arange(L, dtype=jnp.int32)[None, :]
    first_zero = jnp.min(jnp.where(input_s == 0, pos, L), axis=1, keepdims=True)
    mask = (pos < first_zero).astype(jnp.int32)
    length = first_zero.astype(jnp.float32)
    xm = input_s * mask
    ym = output_r * mask
    loss = jnp.sum((xm != ym).astype(jnp.float32), axis=1, keepdims=True)
    acc = 1.0 - loss / length
    return loss[:, 0], acc[:, 0]


if __name__ == "__main__":
    key = jax.random.PRNGKey(0)
    k1, k2, k3 = jax.random.split(key, 3)

    B, L, V = 20, 16, 10  # batch, message length, vocab size (0 = EOS)

    # Deterministic messages: tokens in [1, V-1], then force EOS padding tails
    # so rows have different valid lengths (never zero-length).
    input_s = jax.random.randint(k1, (B, L), 1, V, dtype=jnp.int32)
    output_r = jax.random.randint(k2, (B, L), 1, V, dtype=jnp.int32)
    lengths = jax.random.randint(k3, (B,), 1, L + 1, dtype=jnp.int32)  # per-row valid lengths
    pos = jnp.arange(L, dtype=jnp.int32)[None, :]
    pad_mask = (pos < lengths[:, None]).astype(jnp.int32)
    input_s = input_s * pad_mask                                        # zeros from EOS onward

    # Default tile (single grid step for this small shape).
    loss, extras = loss_rr(input_s, None, None, output_r, None)
    loss = jax.block_until_ready(loss)
    acc = jax.block_until_ready(extras["acc"])

    loss_ref, acc_ref = _loss_rr_ref(input_s, output_r)
    assert jnp.allclose(loss, loss_ref), (loss, loss_ref)
    assert jnp.allclose(acc, acc_ref), (acc, acc_ref)

    # Small explicit tile to exercise multi-step grid + batch padding path.
    loss2, extras2 = loss_rr(input_s, None, None, output_r, None, block_b=8)
    loss2 = jax.block_until_ready(loss2)
    acc2 = jax.block_until_ready(extras2["acc"])
    assert jnp.allclose(loss2, loss_ref), (loss2, loss_ref)
    assert jnp.allclose(acc2, acc_ref), (acc2, acc_ref)

    print("KERNEL_OK")
</pallas_src>

<mosaic_0001>
module attributes {stable_mosaic.version = 11 : i64} {
  func.func @_loss_rr_kernel(%arg0: i32, %arg1: memref<24x16xi32, #tpu.memory_space<vmem>>, %arg2: memref<24x16xi32, #tpu.memory_space<vmem>>, %arg3: memref<24x2xf32, #tpu.memory_space<vmem>>) attributes {dimension_semantics = [#tpu.dimension_semantics<parallel>], iteration_bounds = array<i64: 1>, scalar_prefetch = 0 : i64, scratch_operands = 0 : i64, tpu.core_type = #tpu.core_type<tc>, window_params = [{transform_indices = @transform_0, window_bounds = array<i64: 24, 16>}, {transform_indices = @transform_1, window_bounds = array<i64: 24, 16>}, {transform_indices = @transform_2, window_bounds = array<i64: 24, 2>}]} {
    %c0 = arith.constant 0 : index
    %c0_0 = arith.constant 0 : index
    %0 = vector.load %arg1[%c0, %c0_0] : memref<24x16xi32, #tpu.memory_space<vmem>>, vector<24x16xi32>
    %c0_1 = arith.constant 0 : index
    %c0_2 = arith.constant 0 : index
    %1 = vector.load %arg2[%c0_1, %c0_2] : memref<24x16xi32, #tpu.memory_space<vmem>>, vector<24x16xi32>
    %2 = tpu.iota {dimensions = array<i32: 1>} : vector<24x16xi32>
    %c0_i32 = arith.constant 0 : i32
    %3 = vector.broadcast %c0_i32 : i32 to vector<24x16xi32>
    %4 = arith.cmpi eq, %0, %3 : vector<24x16xi32>
    %c16_i32 = arith.constant 16 : i32
    %5 = vector.broadcast %c16_i32 : i32 to vector<24x16xi32>
    %6 = arith.select %4, %2, %5 : vector<24x16xi1>, vector<24x16xi32>
    %cst = arith.constant dense<2147483647> : vector<24xi32>
    %7 = vector.multi_reduction <minsi>, %6, %cst [1] : vector<24x16xi32> to vector<24xi32>
    %8 = vector.shape_cast %7 : vector<24xi32> to vector<24x1xi32>
    %9 = vector.broadcast %8 : vector<24x1xi32> to vector<24x16xi32>
    %10 = arith.cmpi slt, %2, %9 : vector<24x16xi32>
    %11 = arith.cmpi ne, %0, %1 : vector<24x16xi32>
    %12 = arith.andi %11, %10 : vector<24x16xi1>
    %13 = arith.extui %12 : vector<24x16xi1> to vector<24x16xi32>
    %cst_3 = arith.constant dense<0> : vector<24xi32>
    %14 = vector.multi_reduction <add>, %13, %cst_3 [1] : vector<24x16xi32> to vector<24xi32>
    %15 = vector.shape_cast %14 : vector<24xi32> to vector<24x1xi32>
    %16 = arith.sitofp %15 : vector<24x1xi32> to vector<24x1xf32>
    %17 = arith.sitofp %8 : vector<24x1xi32> to vector<24x1xf32>
    %18 = arith.divf %16, %17 : vector<24x1xf32>
    %cst_4 = arith.constant 1.000000e+00 : f32
    %19 = vector.broadcast %cst_4 : f32 to vector<24x1xf32>
    %20 = arith.subf %19, %18 : vector<24x1xf32>
    %21 = tpu.concatenate %16, %20 in 1 : vector<24x1xf32>, vector<24x1xf32> -> vector<24x2xf32>
    %c0_5 = arith.constant 0 : index
    %c0_6 = arith.constant 0 : index
    %22 = vector.load %arg3[%c0_5, %c0_6] : memref<24x2xf32, #tpu.memory_space<vmem>>, vector<24x2xf32>
    tpu.vector_store %arg3[%c0_5, %c0_6], %21 {strides = array<i32>} : memref<24x2xf32, #tpu.memory_space<vmem>>, vector<24x2xf32>,
    return
  }
  func.func @transform_0(%arg0: i32) -> (i32, i32) {
    %c0_i32 = arith.constant 0 : i32
    %c0_i32_0 = arith.constant 0 : i32
    return %arg0, %c0_i32 : i32, i32
  }
  func.func @transform_1(%arg0: i32) -> (i32, i32) {
    %c0_i32 = arith.constant 0 : i32
    %c0_i32_0 = arith.constant 0 : i32
    return %arg0, %c0_i32 : i32, i32
  }
  func.func @transform_2(%arg0: i32) -> (i32, i32) {
    %c0_i32 = arith.constant 0 : i32
    %c0_i32_0 = arith.constant 0 : i32
    return %arg0, %c0_i32 : i32, i32
  }
}

</mosaic_0001>

<bundles_post_ra>
// kernel: tpu_custom_call.1
= control target key start
LH: loop header
LB: loop body
LE: loop exit
PB: predicated region body
PF: predicated region fallthrough
CT: control target
= control target key end

     0   :  { %v17_v0 = vlaneseq  ;;  %vm25_vm0 = vcmask 130048   ;;  %v156_v47 = vmov 0   ;;  %s221_s0 = inlined_call_operand.vmem [shape: s32[24,16], index: 0, kind: input, shape index: {}]   ;;  %s222_s1 = inlined_call_operand.vmem [shape: s32[24,16], index: 1, kind: input, shape index: {}]   ;;  %s223_s2 = inlined_call_operand.vmem [shape: f32[24,2], index: 2, kind: output, shape index: {}]  }
   0x1   :  { %v11_v1 = vld [vmem:[%s221_s0] sm:$0xff]  ;;  %v178_v2 = vld [vmem:[%s221_s0 + $0x10] sm:$0xff]  ;;  %v183_v3 = vld [vmem:[%s221_s0 + $0x8] sm:$0xff] }
   0x2   :  { %v185_v4 = vand.u32 127, %v17_v0  ;;  %vm19_vm1 = vcmp.eq.s32.totalorder %v11_v1, 0  ;;  %vm21_vm2 = vcmp.eq.s32.totalorder %v178_v2, 0  ;;  %vm20_vm3 = vcmp.eq.s32.totalorder %v183_v3, 0  ;;  %v14_v32 = vld [vmem:[%s222_s1] sm:$0xff]  ;;  %v15_v40 = vld [vmem:[%s222_s1 + $0x8] sm:$0xff] }
   0x3   :  { %vm74_vm7 = vcmp.ne.s32.totalorder %v11_v1, %v14_v32  ;;  %v16_v44 = vld [vmem:[%s222_s1 + $0x10] sm:$0xff]  ;;  %vm75_vm10 = vcmp.ne.s32.totalorder %v183_v3, %v15_v40 }
   0x4   :  { %v22_v5 = vsel %vm19_vm1, %v185_v4, 16  ;;  %v24_v6 = vsel %vm21_vm2, %v185_v4, 16  ;;  %v23_v7 = vsel %vm20_vm3, %v185_v4, 16  ;;  %vm76_vm11 = vcmp.ne.s32.totalorder %v178_v2, %v16_v44 }
   0x5   :  { %v26_v8 = vsel %vm25_vm0, %v22_v5, 2147483647  ;;  %v56_v9 = vsel %vm25_vm0, %v24_v6, 2147483647  ;;  %v41_v10 = vsel %vm25_vm0, %v23_v7, 2147483647 }
   0x6   :  { %v28_v11 = vshra.s32 %v26_v8, 16  ;;  %v58_v12 = vshra.s32 %v56_v9, 16  ;;  %v43_v13 = vshra.s32 %v41_v10, 16  ;;  %v27_v17 = vand.u32 65535, %v26_v8 }
   0x7   :  { %v57_v18 = vand.u32 65535, %v56_v9  ;;  %v42_v20 = vand.u32 65535, %v41_v10  ;;  %vm141_vm1 = vcmask 15360  }
   0x8   :  { %v30_v14 = vcvt.s32.f32 %v28_v11  ;;  %v60_v15 = vcvt.s32.f32 %v58_v12  ;;  %v45_v16 = vcvt.s32.f32 %v43_v13  ;;  %v29_v19 = vcvt.s32.f32 %v27_v17 }
   0x9   :  { %v59_v23 = vcvt.s32.f32 %v57_v18  ;;  %v44_v25 = vcvt.s32.f32 %v42_v20 }
   0xa   :  { %31 = vmin.xlane.f32.xlu0 %v30_v14  ;;  %61 = vmin.xlane.f32.xlu1 %v60_v15 }
   0xe   :  { %46 = vmin.xlane.f32.xlu0 %v45_v16 }
  0x97   :  { %v32_v21 = vpop.xlane.xlu0 %31  ;;  %v62_v22 = vpop.xlane.xlu1 %61 }
  0x98   :  { %vm33_vm4 = vcmp.eq.f32.partialorder %v30_v14, %v32_v21  ;;  %vm63_vm5 = vcmp.eq.f32.partialorder %v60_v15, %v62_v22  ;;  %v38_v29 = vcvt.f32.s32 %v32_v21  ;;  %v68_v30 = vcvt.f32.s32 %v62_v22 }
  0x99   :  { %v34_v24 = vsel %vm33_vm4, %v29_v19, inf  ;;  %v64_v27 = vsel %vm63_vm5, %v59_v23, inf }
  0x9a   :  { %35 = vmin.xlane.f32.xlu1 %v34_v24  ;;  %v39_v33 = vshll.u32 %v38_v29, 16  ;;  %v69_v37 = vshll.u32 %v68_v30, 16 }
  0x9b   :  { %v47_v26 = vpop.xlane.xlu0 %46 }
  0x9c   :  { %vm48_vm6 = vcmp.eq.f32.partialorder %v45_v16, %v47_v26  ;;  %v53_v34 = vcvt.f32.s32 %v47_v26 }
  0x9d   :  { %v49_v28 = vsel %vm48_vm6, %v44_v25, inf }
  0x9e   :  { %50 = vmin.xlane.f32.xlu0 %v49_v28  ;;  %65 = vmin.xlane.f32.xlu1 %v64_v27  ;;  %v54_v41 = vshll.u32 %v53_v34, 16 }
 0x127   :  { %v36_v31 = vpop.xlane.xlu1 %35 }
 0x128   :  { %v37_v35 = vcvt.f32.s32 %v36_v31 }
 0x12a   :  { %v40_v36 = vadd.s32 %v39_v33, %v37_v35 }
 0x12b   :  { %v51_v38 = vpop.xlane.xlu0 %50  ;;  %v66_v39 = vpop.xlane.xlu1 %65 }
 0x12c   :  { %vm71_vm8 = vcmp.lt.s32.totalorder %v185_v4, %v40_v36  ;;  %v52_v42 = vcvt.f32.s32 %v51_v38  ;;  %v67_v43 = vcvt.f32.s32 %v66_v39  ;;  %v125_v2 = vcvt.s32.f32 %v40_v36 }
 0x12d   :  { %vm77_vm9 = vmand %vm74_vm7, %vm71_vm8 }
 0x12e   :  { %v55_v45 = vadd.s32 %v54_v41, %v52_v42  ;;  %v70_v46 = vadd.s32 %v69_v37, %v67_v43  ;;  %v80_v48 = vsel %vm77_vm9, 1, %v156_v47  ;;  %150 = vrcp.f32 %v125_v2 }
 0x12f   :  { %v83_v49 = vsel %vm25_vm0, %v80_v48, 0 }
 0x130   :  { %vm72_vm12 = vcmp.lt.s32.totalorder %v185_v4, %v55_v45  ;;  %vm73_vm13 = vcmp.lt.s32.totalorder %v185_v4, %v70_v46  ;;  %v85_v50 = vshrl.u32 %v83_v49, 16  ;;  %v84_v59 = vand.u32 65535, %v83_v49 }
 0x131   :  { %vm78_vm14 = vmand %vm75_vm10, %vm72_vm12  ;;  %v126_v3 = vcvt.s32.f32 %v55_v45  ;;  %v127_v5 = vcvt.s32.f32 %v70_v46 }
 0x132   :  { %v81_v51 = vsel %vm78_vm14, 1, %v156_v47  ;;  %vm79_vm15 = vmand %vm76_vm11, %vm73_vm13  ;;  %v87_v52 = vcvt.s32.f32 %v85_v50  ;;  %v86_v62 = vcvt.s32.f32 %v84_v59 }
 0x133   :  { %v96_v53 = vsel %vm25_vm0, %v81_v51, 0  ;;  %v82_v54 = vsel %vm79_vm15, 1, %v156_v47  ;;  %152 = vrcp.f32 %v126_v3 }
 0x134   :  { %v98_v55 = vshrl.u32 %v96_v53, 16  ;;  %v109_v56 = vsel %vm25_vm0, %v82_v54, 0  ;;  %90 = vadd.xlane.f32.xlu0 %v87_v52  ;;  %v97_v61 = vand.u32 65535, %v96_v53  ;;  %154 = vrcp.f32 %v127_v5 }
 0x135   :  { %v111_v57 = vshrl.u32 %v109_v56, 16  ;;  %v110_v63 = vand.u32 65535, %v109_v56  ;;  %vm137_vm0 = vcmask 7168  }
 0x136   :  { %v100_v58 = vcvt.s32.f32 %v98_v55  ;;  %v99_v0 = vcvt.s32.f32 %v97_v61 }
 0x137   :  { %v113_v60 = vcvt.s32.f32 %v111_v57  ;;  %v112_v1 = vcvt.s32.f32 %v110_v63 }
 0x138   :  { %103 = vadd.xlane.f32.xlu1 %v100_v58  ;;  %v151_v23 = vpop.eup %150 }
 0x139   :  { %116 = vadd.xlane.f32.xlu0 %v113_v60 }
 0x13c   :  { %88 = vadd.xlane.f32.xlu1 %v86_v62 }
 0x13d   :  { %101 = vadd.xlane.f32.xlu0 %v99_v0  ;;  %v153_v25 = vpop.eup %152 }
 0x13e   :  { %v155_v31 = vpop.eup %154 }
 0x140   :  { %114 = vadd.xlane.f32.xlu1 %v112_v1 }
 0x1c1   :  { %v91_v4 = vpop.xlane.xlu0 %90 }
 0x1c2   :  { %v93_v7 = vcvt.f32.s32 %v91_v4 }
 0x1c4   :  { %v94_v11 = vshll.u32 %v93_v7, 16 }
 0x1c5   :  { %v104_v6 = vpop.xlane.xlu1 %103 }
 0x1c6   :  { %v117_v8 = vpop.xlane.xlu0 %116  ;;  %v106_v9 = vcvt.f32.s32 %v104_v6 }
 0x1c7   :  { %v119_v12 = vcvt.f32.s32 %v117_v8 }
 0x1c8   :  { %v107_v15 = vshll.u32 %v106_v9, 16 }
 0x1c9   :  { %v89_v10 = vpop.xlane.xlu1 %88  ;;  %v120_v20 = vshll.u32 %v119_v12, 16 }
 0x1ca   :  { %v102_v13 = vpop.xlane.xlu0 %101  ;;  %v92_v14 = vcvt.f32.s32 %v89_v10 }
 0x1cb   :  { %v105_v16 = vcvt.f32.s32 %v102_v13 }
 0x1cc   :  { %v95_v17 = vadd.s32 %v94_v11, %v92_v14 }
 0x1cd   :  { %v108_v18 = vadd.s32 %v107_v15, %v105_v16  ;;  %v115_v19 = vpop.xlane.xlu1 %114 }
 0x1ce   :  { %v122_v21 = vcvt.s32.f32 %v95_v17  ;;  %v118_v22 = vcvt.f32.s32 %v115_v19 }
 0x1cf   :  { %v123_v24 = vcvt.s32.f32 %v108_v18 }
 0x1d0   :  { %v129_v26 = vmul.f32 %v151_v23, %v122_v21  ;;  %v121_v27 = vadd.s32 %v120_v20, %v118_v22 }
 0x1d1   :  { %v131_v28 = vmul.f32 %v153_v25, %v123_v24 }
 0x1d2   :  { %v134_v29 = vsub.f32 1.0, %v129_v26  ;;  %v124_v30 = vcvt.s32.f32 %v121_v27 }
 0x1d3   :  { %v135_v32 = vsub.f32 1.0, %v131_v28 }
 0x1d4   :  { %v138_v33 = vsel %vm137_vm0, %v122_v21, %v134_v29  ;;  %v133_v34 = vmul.f32 %v155_v31, %v124_v30 }
 0x1d5   :  { %v139_v35 = vsel %vm137_vm0, %v123_v24, %v135_v32  ;;  %142 = vst.msk [vmem:[%s223_s2] sm:$0xff] %vm141_vm1, %v138_v33 }
 0x1d6   :  { %143 = vst.msk [vmem:[%s223_s2 + $0x8] sm:$0xff] %vm141_vm1, %v139_v35  ;;  %v136_v36 = vsub.f32 1.0, %v133_v34 }
 0x1d8   :  { %v140_v37 = vsel %vm137_vm0, %v124_v30, %v136_v36 }
 0x1d9   :  { %144 = vst.msk [vmem:[%s223_s2 + $0x10] sm:$0xff] %vm141_vm1, %v140_v37 }

</bundles_post_ra>
